<compile_context>
chip_gen: v6e
topology: v6e:2x2x1
jax: 0.10.0
libtpu: 0.0.40
codegen_flags: <defaults>
</compile_context>

<pallas_src>
import jax
import jax.numpy as jnp
from jax import lax
from jax.experimental import pallas as pl
from jax.experimental.pallas import tpu as pltpu


def decoder_kernel(tok_ref, ew_ref, ek_ref, h_ref, wm_ref, wv_ref, out_ref):
    f32 = jnp.float32
    H = wm_ref.shape[0]
    O = wm_ref.shape[1] - 8 * H
    B, S, _ = ek_ref.shape
    V = ew_ref.shape[0]
    P = out_ref.shape[1]

    h = h_ref[...]                          # (B, H) previous hidden state
    enc = ek_ref[:, :, 0:H]                 # (B, S, H) encoder outputs
    kpb = ek_ref[:, :, H:2 * H]             # (B, S, H) cached enc @ Wa_k + ba

    # packed small vectors
    va = wv_ref[0:1, 0:H]                   # (1, H)
    ln_g = wv_ref[1:2, 0:H]                 # (1, H)
    ln_b = wv_ref[2:3, 0:H]                 # (1, H)
    bfh = wv_ref[3:4, 0:H]                  # (1, H)
    bout = wv_ref[4:5, 0:O]                 # (1, O)

    # ---- fused hidden-state matmul: [qp | gh] = h @ [Wa_q | Whh]  (B, 4H) ----
    hq_hh = jnp.dot(h, wm_ref[:, 0:4 * H], preferred_element_type=f32)
    qp = hq_hh[:, 0:H]                      # attention query projection
    gh_rz = hq_hh[:, H:3 * H]               # hidden path, r/z gates
    gh_n = hq_hh[:, 3 * H:4 * H]            # hidden path, n gate

    # ---------------- Bahdanau attention ----------------
    energy = jnp.tanh(qp[:, None, :] + kpb)                       # (B, S, H)
    scores = jnp.sum(energy * va[:, None, :], axis=-1)            # (B, S)
    scores = scores - jnp.max(scores, axis=-1, keepdims=True)
    e = jnp.exp(scores)
    attn = e / jnp.sum(e, axis=-1, keepdims=True)                 # (B, S)
    # Context: VPU broadcast-mul + sublane reduce (negligible at these sizes).
    # TODO(synk): at large S/H fold this (and the va reduce) into an S-blocked
    #             MXU streaming loop per the scale-up plan.
    ctx = jnp.sum(attn[:, :, None] * enc, axis=1)                 # (B, H)

    # ---- embedding lookup fused into the GRU input path ----
    # gather(embedding)[ids] @ W_ih_e  ==  onehot(ids) @ (embedding @ W_ih_e)
    ids = tok_ref[...]                                            # (B, 1) int32
    onehot = jnp.where(lax.broadcasted_iota(jnp.int32, (B, V), 1) == ids,
                       jnp.float32(1), jnp.float32(0))            # (B, V)
    gi = (jnp.dot(onehot, ew_ref[...], preferred_element_type=f32)
          + jnp.dot(ctx, wm_ref[:, 4 * H:7 * H], preferred_element_type=f32))  # (B, 3H)

    # ---------------- GRU cell (seq_len = 1, biases zero by init) ----------------
    rz = jax.nn.sigmoid(gi[:, 0:2 * H] + gh_rz)                   # one EUP pass
    r = rz[:, 0:H]
    z = rz[:, H:2 * H]
    n = jnp.tanh(gi[:, 2 * H:3 * H] + r * gh_n)
    h_new = (1.0 - z) * n + z * h                                 # (B, H)

    # ---------------- LayerNorm on GRU outputs ----------------
    mu = jnp.mean(h_new, axis=-1, keepdims=True)
    var = jnp.mean(jnp.square(h_new - mu), axis=-1, keepdims=True)
    out_ln = (h_new - mu) * lax.rsqrt(var + 1e-5) * ln_g + ln_b   # (B, H)

    # ---------------- heads ----------------
    hout = jnp.dot(h_new, wm_ref[:, 7 * H:8 * H],
                   preferred_element_type=f32) + bfh              # (B, H)
    pred = jnp.dot(out_ln, wm_ref[:, 8 * H:8 * H + O],
                   preferred_element_type=f32) + bout             # (B, O)

    # ---------------- single lane-packed output store ----------------
    pad = P - (O + H + S)
    pieces = [pred, hout, attn]
    if pad > 0:
        pieces.append(jnp.zeros((B, pad), f32))
    out_ref[...] = jnp.concatenate(pieces, axis=-1)               # (B, P)


def pack_params(params):
    """One-time parameter packing/fusion (eval mode). Do this once, not per step."""
    H = params["waq"].shape[0]
    O = params["wfo"].shape[1]
    # fused GRU gate weights, gate order r, z, n
    wih_e = jnp.concatenate(
        [params["wir_e"], params["wiz_e"], params["win_e"]], axis=1)   # (E, 3H)
    wih_c = jnp.concatenate(
        [params["wir_c"], params["wiz_c"], params["win_c"]], axis=1)   # (H, 3H)
    whh = jnp.concatenate(
        [params["whr"], params["whz"], params["whn"]], axis=1)         # (H, 3H)
    # fc -> fc_out folded (valid only with dropout = identity, i.e. eval)
    w_out = params["wfc"] @ params["wfo"]                              # (H, O)
    b_out = params["bfc"] @ params["wfo"] + params["bfo"]              # (1, O)
    # embedding table pre-projected through the fused GRU input weights
    emb_wih = params["embedding"] @ wih_e                              # (V, 3H)
    # single (H, 8H+O) weight blob: [Wa_q | Whh | Wih_c | Wfh | W_out]
    wmat = jnp.concatenate(
        [params["waq"], whh, wih_c, params["wfh"], w_out], axis=1)
    # packed small vectors: va, ln_gamma, ln_beta, b_fc_hidden, b_out
    L = max(H, O)
    pad_row = lambda v: jnp.pad(v, ((0, 0), (0, L - v.shape[1])))
    wvec = jnp.concatenate(
        [pad_row(params["va"]), pad_row(params["ln_g"]), pad_row(params["ln_b"]),
         pad_row(params["bfh"]), pad_row(b_out)], axis=0)              # (5, L)
    return {
        "emb_wih": emb_wih,
        "wmat": wmat,
        "wvec": wvec,
        # kept for the per-sequence key precompute
        "wak": params["wak"],
        "ba": params["ba"],
    }


def precompute_keys(packed, encoder_outputs):
    """Per-SEQUENCE precompute (not per decode step): key projection + ba,
    concatenated with the encoder outputs into one (B, S, 2H) buffer."""
    kpb = (jnp.einsum("bsh,hd->bsd", encoder_outputs, packed["wak"])
           + packed["ba"][None, :, :])
    return jnp.concatenate([encoder_outputs, kpb], axis=-1)            # (B, S, 2H)


def decoder_forward(packed, token_ids, enc_keys, hidden):
    """Pallas-backed per-step forward. Returns (predictions, hidden, attn_weights)."""
    B, S, H2 = enc_keys.shape
    H = H2 // 2
    O = packed["wmat"].shape[1] - 8 * H
    P = max(128, ((O + H + S + 127) // 128) * 128)   # lane-dense packed output width

    tok = token_ids[:, 0:1].astype(jnp.int32)        # (B, 1)
    vmem = pl.BlockSpec(memory_space=pltpu.MemorySpace.VMEM)
    inputs = (tok, packed["emb_wih"], enc_keys, hidden, packed["wmat"], packed["wvec"])
    out = pl.pallas_call(
        decoder_kernel,
        out_shape=jax.ShapeDtypeStruct((B, P), jnp.float32),
        in_specs=[vmem] * len(inputs),
        out_specs=vmem,
    )(*inputs)

    preds = out[:, 0:O]
    h_out = out[:, O:O + H]
    attn = out[:, O + H:O + H + S]
    # torch attention returns weights of shape (B, 1, S)
    return preds, h_out, attn[:, None, :]


def reference_forward(params, token_ids, encoder_outputs, hidden):
    """Pure-JAX reference with the original, unfused math (correctness oracle)."""
    emb = params["embedding"][token_ids[:, 0]]
    enc = encoder_outputs
    h = hidden
    qp = h @ params["waq"]
    kp = jnp.einsum("bsh,hd->bsd", enc, params["wak"])
    energy = jnp.tanh(qp[:, None, :] + kp + params["ba"][None, :, :])
    scores = jnp.sum(energy * params["va"][None, :, :], axis=-1)
    attn = jax.nn.softmax(scores, axis=-1)
    ctx = jnp.einsum("bs,bsh->bh", attn, enc)
    r = jax.nn.sigmoid(emb @ params["wir_e"] + ctx @ params["wir_c"] + h @ params["whr"])
    z = jax.nn.sigmoid(emb @ params["wiz_e"] + ctx @ params["wiz_c"] + h @ params["whz"])
    n = jnp.tanh(emb @ params["win_e"] + ctx @ params["win_c"] + r * (h @ params["whn"]))
    h_new = (1.0 - z) * n + z * h
    mu = jnp.mean(h_new, axis=-1, keepdims=True)
    var = jnp.mean((h_new - mu) ** 2, axis=-1, keepdims=True)
    out_ln = (h_new - mu) / jnp.sqrt(var + 1e-5) * params["ln_g"] + params["ln_b"]
    hout = h_new @ params["wfh"] + params["bfh"]
    o = out_ln @ params["wfc"] + params["bfc"]
    preds = o @ params["wfo"] + params["bfo"]
    return preds, hout, attn[:, None, :]


def init_params(key, vocab, E, H, O):
    keys = iter(jax.random.split(key, 32))

    def u(shape, fan_in, fan_out=None):
        if fan_out is None:
            scale = 1.0 / jnp.sqrt(fan_in)
        else:
            scale = jnp.sqrt(6.0 / (fan_in + fan_out))  # xavier-uniform style
        return jax.random.uniform(next(keys), shape, jnp.float32, -scale, scale)

    p = {}
    p["embedding"] = jax.random.normal(next(keys), (vocab, E), jnp.float32) * 0.1
    # attention: Wa : Linear(2H, H) split into query/key halves; Va : Linear(H, 1)
    p["waq"] = u((H, H), 2 * H, H)
    p["wak"] = u((H, H), 2 * H, H)
    p["ba"] = u((1, H), 2 * H)
    p["va"] = u((1, H), H, 1)
    # GRU weights (biases are initialized to 0 by _initialize_weights, so omitted)
    for g in ("r", "z", "n"):
        p[f"wi{g}_e"] = u((E, H), E + H, H)   # weight_ih, embedding part (xavier)
        p[f"wi{g}_c"] = u((H, H), E + H, H)   # weight_ih, context part   (xavier)
        p[f"wh{g}"] = u((H, H), H)            # weight_hh (kaiming-uniform style)
    # layer norm
    p["ln_g"] = jnp.ones((1, H), jnp.float32)
    p["ln_b"] = jnp.zeros((1, H), jnp.float32)
    # fc_hidden, fc, fc_out (default Linear init style)
    p["wfh"] = u((H, H), H); p["bfh"] = u((1, H), H)
    p["wfc"] = u((H, H), H); p["bfc"] = u((1, H), H)
    p["wfo"] = u((H, O), H); p["bfo"] = u((1, O), H)
    return p


if __name__ == "__main__":
    B, S = 2, 8
    vocab, E, H, O = 50, 16, 32, 24   # input_dim, embedding_dim, hidden_dim, output_dim

    key = jax.random.PRNGKey(0)
    kp_, kt, ke, kh = jax.random.split(key, 4)
    params = init_params(kp_, vocab, E, H, O)
    packed = pack_params(params)                 # one-time weight fusion/folding (eval mode)

    token_ids = jax.random.randint(kt, (B, 1), 0, vocab)             # decoder input (B, 1)
    encoder_outputs = jax.random.normal(ke, (B, S, H), jnp.float32)
    hidden = jax.random.normal(kh, (B, H), jnp.float32)

    enc_keys = precompute_keys(packed, encoder_outputs)  # once per sequence, not per step
    preds, h_out, attn_w = decoder_forward(packed, token_ids, enc_keys, hidden)
    jax.block_until_ready((preds, h_out, attn_w))

    rp, rh, ra = reference_forward(params, token_ids, encoder_outputs, hidden)
    assert preds.shape == (B, O) and h_out.shape == (B, H) and attn_w.shape == (B, 1, S)
    assert jnp.allclose(preds, rp, atol=2e-3, rtol=2e-3)
    assert jnp.allclose(h_out, rh, atol=2e-3, rtol=2e-3)
    assert jnp.allclose(attn_w, ra, atol=2e-3, rtol=2e-3)
    print("KERNEL_OK")
</pallas_src>

<mosaic_0001>
module attributes {stable_mosaic.version = 11 : i64} {
  func.func @decoder_kernel(%arg0: memref<2x1xi32, #tpu.memory_space<vmem>>, %arg1: memref<50x96xf32, #tpu.memory_space<vmem>>, %arg2: memref<2x8x64xf32, #tpu.memory_space<vmem>>, %arg3: memref<2x32xf32, #tpu.memory_space<vmem>>, %arg4: memref<32x280xf32, #tpu.memory_space<vmem>>, %arg5: memref<5x32xf32, #tpu.memory_space<vmem>>, %arg6: memref<2x128xf32, #tpu.memory_space<vmem>>) attributes {dimension_semantics = [], scalar_prefetch = 0 : i64, scratch_operands = 0 : i64, tpu.core_type = #tpu.core_type<tc>} {
    %c0 = arith.constant 0 : index
    %c0_0 = arith.constant 0 : index
    %0 = vector.load %arg3[%c0, %c0_0] : memref<2x32xf32, #tpu.memory_space<vmem>>, vector<2x32xf32>
    %c0_1 = arith.constant 0 : index
    %c0_2 = arith.constant 0 : index
    %c0_3 = arith.constant 0 : index
    %1 = vector.load %arg2[%c0_1, %c0_2, %c0_3] : memref<2x8x64xf32, #tpu.memory_space<vmem>>, vector<2x8x32xf32>
    %c0_4 = arith.constant 0 : index
    %c0_5 = arith.constant 0 : index
    %c32 = arith.constant 32 : index
    %2 = vector.load %arg2[%c0_4, %c0_5, %c32] : memref<2x8x64xf32, #tpu.memory_space<vmem>>, vector<2x8x32xf32>
    %c0_6 = arith.constant 0 : index
    %c0_7 = arith.constant 0 : index
    %3 = vector.load %arg5[%c0_6, %c0_7] : memref<5x32xf32, #tpu.memory_space<vmem>>, vector<1x32xf32>
    %c1 = arith.constant 1 : index
    %c0_8 = arith.constant 0 : index
    %4 = vector.load %arg5[%c1, %c0_8] : memref<5x32xf32, #tpu.memory_space<vmem>>, vector<1x32xf32>
    %c2 = arith.constant 2 : index
    %c0_9 = arith.constant 0 : index
    %5 = vector.load %arg5[%c2, %c0_9] : memref<5x32xf32, #tpu.memory_space<vmem>>, vector<1x32xf32>
    %c3 = arith.constant 3 : index
    %c0_10 = arith.constant 0 : index
    %6 = vector.load %arg5[%c3, %c0_10] : memref<5x32xf32, #tpu.memory_space<vmem>>, vector<1x32xf32>
    %c4 = arith.constant 4 : index
    %c0_11 = arith.constant 0 : index
    %7 = vector.load %arg5[%c4, %c0_11] : memref<5x32xf32, #tpu.memory_space<vmem>>, vector<1x24xf32>
    %c0_12 = arith.constant 0 : index
    %c0_13 = arith.constant 0 : index
    %8 = vector.load %arg4[%c0_12, %c0_13] : memref<32x280xf32, #tpu.memory_space<vmem>>, vector<32x128xf32>
    %cst = arith.constant dense<0.000000e+00> : vector<2x128xf32>
    %9 = tpu.matmul %0, %8, %cst {dimension_numbers = #tpu.dot_dimension_numbers<[1], [0], [0], [1], [0, 0, 1, 1], [], []>} : vector<2x32xf32>, vector<32x128xf32>, vector<2x128xf32> -> vector<2x128xf32>
    %10 = vector.extract_strided_slice %9 {offsets = [0, 0], sizes = [2, 32], strides = [1, 1]} : vector<2x128xf32> to vector<2x32xf32>
    %11 = vector.extract_strided_slice %9 {offsets = [0, 32], sizes = [2, 64], strides = [1, 1]} : vector<2x128xf32> to vector<2x64xf32>
    %12 = vector.extract_strided_slice %9 {offsets = [0, 96], sizes = [2, 32], strides = [1, 1]} : vector<2x128xf32> to vector<2x32xf32>
    %13 = vector.shape_cast %10 : vector<2x32xf32> to vector<2x1x32xf32>
    %14 = vector.broadcast %13 : vector<2x1x32xf32> to vector<2x8x32xf32>
    %15 = arith.addf %14, %2 : vector<2x8x32xf32>
    %16 = math.tanh %15 : vector<2x8x32xf32>
    %17 = vector.shape_cast %3 : vector<1x32xf32> to vector<1x1x32xf32>
    %18 = vector.broadcast %17 : vector<1x1x32xf32> to vector<2x8x32xf32>
    %19 = arith.mulf %16, %18 : vector<2x8x32xf32>
    %cst_14 = arith.constant dense<0.000000e+00> : vector<2x8xf32>
    %20 = vector.multi_reduction <add>, %19, %cst_14 [2] : vector<2x8x32xf32> to vector<2x8xf32>
    %cst_15 = arith.constant dense<0xFF800000> : vector<2xf32>
    %21 = vector.multi_reduction <maximumf>, %20, %cst_15 [1] : vector<2x8xf32> to vector<2xf32>
    %22 = vector.shape_cast %21 : vector<2xf32> to vector<2x1xf32>
    %23 = vector.broadcast %22 : vector<2x1xf32> to vector<2x8xf32>
    %24 = arith.subf %20, %23 : vector<2x8xf32>
    %25 = math.exp %24 : vector<2x8xf32>
    %cst_16 = arith.constant dense<0.000000e+00> : vector<2xf32>
    %26 = vector.multi_reduction <add>, %25, %cst_16 [1] : vector<2x8xf32> to vector<2xf32>
    %27 = vector.shape_cast %26 : vector<2xf32> to vector<2x1xf32>
    %28 = vector.broadcast %27 : vector<2x1xf32> to vector<2x8xf32>
    %29 = arith.divf %25, %28 : vector<2x8xf32>
    %30 = vector.shape_cast %29 : vector<2x8xf32> to vector<2x8x1xf32>
    %31 = vector.broadcast %30 : vector<2x8x1xf32> to vector<2x8x32xf32>
    %32 = arith.mulf %31, %1 : vector<2x8x32xf32>
    %cst_17 = arith.constant dense<0.000000e+00> : vector<2x32xf32>
    %33 = vector.multi_reduction <add>, %32, %cst_17 [1] : vector<2x8x32xf32> to vector<2x32xf32>
    %c0_18 = arith.constant 0 : index
    %c0_19 = arith.constant 0 : index
    %34 = vector.load %arg0[%c0_18, %c0_19] : memref<2x1xi32, #tpu.memory_space<vmem>>, vector<2x1xi32>
    %35 = tpu.iota {dimensions = array<i32: 1>} : vector<2x50xi32>
    %36 = vector.broadcast %34 : vector<2x1xi32> to vector<2x50xi32>
    %37 = arith.cmpi eq, %35, %36 : vector<2x50xi32>
    %cst_20 = arith.constant 1.000000e+00 : f32
    %cst_21 = arith.constant 0.000000e+00 : f32
    %38 = vector.broadcast %cst_20 : f32 to vector<2x50xf32>
    %39 = vector.broadcast %cst_21 : f32 to vector<2x50xf32>
    %40 = arith.select %37, %38, %39 : vector<2x50xi1>, vector<2x50xf32>
    %c0_22 = arith.constant 0 : index
    %c0_23 = arith.constant 0 : index
    %41 = vector.load %arg1[%c0_22, %c0_23] : memref<50x96xf32, #tpu.memory_space<vmem>>, vector<50x96xf32>
    %cst_24 = arith.constant dense<0.000000e+00> : vector<2x96xf32>
    %42 = tpu.matmul %40, %41, %cst_24 {dimension_numbers = #tpu.dot_dimension_numbers<[1], [0], [0], [1], [0, 0, 1, 1], [], []>} : vector<2x50xf32>, vector<50x96xf32>, vector<2x96xf32> -> vector<2x96xf32>
    %c0_25 = arith.constant 0 : index
    %c128 = arith.constant 128 : index
    %43 = vector.load %arg4[%c0_25, %c128] : memref<32x280xf32, #tpu.memory_space<vmem>>, vector<32x96xf32>
    %cst_26 = arith.constant dense<0.000000e+00> : vector<2x96xf32>
    %44 = tpu.matmul %33, %43, %cst_26 {dimension_numbers = #tpu.dot_dimension_numbers<[1], [0], [0], [1], [0, 0, 1, 1], [], []>} : vector<2x32xf32>, vector<32x96xf32>, vector<2x96xf32> -> vector<2x96xf32>
    %45 = arith.addf %42, %44 : vector<2x96xf32>
    %46 = vector.extract_strided_slice %45 {offsets = [0, 0], sizes = [2, 64], strides = [1, 1]} : vector<2x96xf32> to vector<2x64xf32>
    %47 = arith.addf %46, %11 : vector<2x64xf32>
    %48 = arith.negf %47 : vector<2x64xf32>
    %49 = math.exp %48 : vector<2x64xf32>
    %cst_27 = arith.constant 1.000000e+00 : f32
    %50 = vector.broadcast %cst_27 : f32 to vector<2x64xf32>
    %51 = arith.addf %50, %49 : vector<2x64xf32>
    %52 = arith.divf %50, %51 : vector<2x64xf32>
    %53 = vector.extract_strided_slice %52 {offsets = [0, 0], sizes = [2, 32], strides = [1, 1]} : vector<2x64xf32> to vector<2x32xf32>
    %54 = vector.extract_strided_slice %52 {offsets = [0, 32], sizes = [2, 32], strides = [1, 1]} : vector<2x64xf32> to vector<2x32xf32>
    %55 = vector.extract_strided_slice %45 {offsets = [0, 64], sizes = [2, 32], strides = [1, 1]} : vector<2x96xf32> to vector<2x32xf32>
    %56 = arith.mulf %53, %12 : vector<2x32xf32>
    %57 = arith.addf %55, %56 : vector<2x32xf32>
    %58 = math.tanh %57 : vector<2x32xf32>
    %cst_28 = arith.constant 1.000000e+00 : f32
    %59 = vector.broadcast %cst_28 : f32 to vector<2x32xf32>
    %60 = arith.subf %59, %54 : vector<2x32xf32>
    %61 = arith.mulf %60, %58 : vector<2x32xf32>
    %62 = arith.mulf %54, %0 : vector<2x32xf32>
    %63 = arith.addf %61, %62 : vector<2x32xf32>
    %cst_29 = arith.constant dense<0.000000e+00> : vector<2xf32>
    %64 = vector.multi_reduction <add>, %63, %cst_29 [1] : vector<2x32xf32> to vector<2xf32>
    %65 = vector.shape_cast %64 : vector<2xf32> to vector<2x1xf32>
    %cst_30 = arith.constant 3.200000e+01 : f32
    %66 = vector.broadcast %cst_30 : f32 to vector<2x1xf32>
    %67 = arith.divf %65, %66 : vector<2x1xf32>
    %68 = vector.broadcast %67 : vector<2x1xf32> to vector<2x32xf32>
    %69 = arith.subf %63, %68 : vector<2x32xf32>
    %70 = arith.mulf %69, %69 : vector<2x32xf32>
    %cst_31 = arith.constant dense<0.000000e+00> : vector<2xf32>
    %71 = vector.multi_reduction <add>, %70, %cst_31 [1] : vector<2x32xf32> to vector<2xf32>
    %72 = vector.shape_cast %71 : vector<2xf32> to vector<2x1xf32>
    %cst_32 = arith.constant 3.200000e+01 : f32
    %73 = vector.broadcast %cst_32 : f32 to vector<2x1xf32>
    %74 = arith.divf %72, %73 : vector<2x1xf32>
    %75 = vector.broadcast %67 : vector<2x1xf32> to vector<2x32xf32>
    %76 = arith.subf %63, %75 : vector<2x32xf32>
    %cst_33 = arith.constant 9.99999974E-6 : f32
    %77 = vector.broadcast %cst_33 : f32 to vector<2x1xf32>
    %78 = arith.addf %74, %77 : vector<2x1xf32>
    %79 = math.rsqrt %78 : vector<2x1xf32>
    %80 = vector.broadcast %79 : vector<2x1xf32> to vector<2x32xf32>
    %81 = arith.mulf %76, %80 : vector<2x32xf32>
    %82 = vector.broadcast %4 : vector<1x32xf32> to vector<2x32xf32>
    %83 = arith.mulf %81, %82 : vector<2x32xf32>
    %84 = vector.broadcast %5 : vector<1x32xf32> to vector<2x32xf32>
    %85 = arith.addf %83, %84 : vector<2x32xf32>
    %c0_34 = arith.constant 0 : index
    %c224 = arith.constant 224 : index
    %86 = vector.load %arg4[%c0_34, %c224] : memref<32x280xf32, #tpu.memory_space<vmem>>, vector<32x32xf32>
    %cst_35 = arith.constant dense<0.000000e+00> : vector<2x32xf32>
    %87 = tpu.matmul %63, %86, %cst_35 {dimension_numbers = #tpu.dot_dimension_numbers<[1], [0], [0], [1], [0, 0, 1, 1], [], []>} : vector<2x32xf32>, vector<32x32xf32>, vector<2x32xf32> -> vector<2x32xf32>
    %88 = vector.broadcast %6 : vector<1x32xf32> to vector<2x32xf32>
    %89 = arith.addf %87, %88 : vector<2x32xf32>
    %c0_36 = arith.constant 0 : index
    %c256 = arith.constant 256 : index
    %90 = vector.load %arg4[%c0_36, %c256] : memref<32x280xf32, #tpu.memory_space<vmem>>, vector<32x24xf32>
    %cst_37 = arith.constant dense<0.000000e+00> : vector<2x24xf32>
    %91 = tpu.matmul %85, %90, %cst_37 {dimension_numbers = #tpu.dot_dimension_numbers<[1], [0], [0], [1], [0, 0, 1, 1], [], []>} : vector<2x32xf32>, vector<32x24xf32>, vector<2x24xf32> -> vector<2x24xf32>
    %92 = vector.broadcast %7 : vector<1x24xf32> to vector<2x24xf32>
    %93 = arith.addf %91, %92 : vector<2x24xf32>
    %cst_38 = arith.constant 0.000000e+00 : f32
    %94 = vector.broadcast %cst_38 : f32 to vector<2x64xf32>
    %95 = tpu.concatenate %93, %89, %29, %94 in 1 : vector<2x24xf32>, vector<2x32xf32>, vector<2x8xf32>, vector<2x64xf32> -> vector<2x128xf32>
    %c0_39 = arith.constant 0 : index
    %c0_40 = arith.constant 0 : index
    %96 = vector.load %arg6[%c0_39, %c0_40] : memref<2x128xf32, #tpu.memory_space<vmem>>, vector<2x128xf32>
    tpu.vector_store %arg6[%c0_39, %c0_40], %95 {strides = array<i32>} : memref<2x128xf32, #tpu.memory_space<vmem>>, vector<2x128xf32>,
    return
  }
}

</mosaic_0001>

<bundles_post_ra>
// kernel: tpu_custom_call.1
= control target key start
LH: loop header
LB: loop body
LE: loop exit
PB: predicated region body
PF: predicated region fallthrough
CT: control target
= control target key end

     0   :  { %11 = vsyncpa [#allocation3], 0  ;;  %s1189_s0 = inlined_call_operand.vmem [shape: s32[2,1], index: 0, kind: input, shape index: {}]   ;;  %s1190_s1 = inlined_call_operand.hbm [shape: f32[50,96], index: 1, kind: input, shape index: {}]   ;;  %s1191_s2 = inlined_call_operand.hbm [shape: f32[2,8,64], index: 2, kind: input, shape index: {}]   ;;  %s1192_s3 = inlined_call_operand.vmem [shape: f32[2,32], index: 3, kind: input, shape index: {}]   ;;  %s1193_s4 = inlined_call_operand.hbm [shape: f32[32,280], index: 4, kind: input, shape index: {}]   ;;  %s1194_s5 = inlined_call_operand.vmem [shape: f32[5,32], index: 5, kind: input, shape index: {}]   ;;  %s1195_s6 = inlined_call_operand.hbm [shape: f32[2,128], index: 6, kind: output, shape index: {}]  }
   0x1   :  { %12 = vsyncpa [#allocation6], 0 }
   0x2   :  { %13 = vsyncpa [#allocation4], 0  ;;  %s985_s21 = smov [#allocation5]   ;;  %s986_s23 = smov [#allocation2]  }
   0x3   :  { %s33_s22 = sshll.u32 %s985_s21, 4  ;;  %s21_s24 = sshll.u32 %s986_s23, 4  ;;  %s34_s22 = int_to_ptr.vmem [resolvable:$true] %s33_s22  ;;  %s22_s24 = int_to_ptr.vmem [resolvable:$true] %s21_s24 }
   0x4   :  { %s907_s25 = scalar_lea.vmem %s34_s22, 256  ;;  %p912_p1 = scmp.lt.s32.totalorder %s34_s22, %s34_s22 }
   0x5   :  { %p908_p0 = scmp.ne.s32.totalorder %s34_s22, %s907_s25  ;;  %p913_p2 = scmp.lt.s32.totalorder %s907_s25, %s907_s25 }
   0x7   :  { %p914_p3 = por %p913_p2, %p912_p1 }
   0x9   :  { %p915_p4 = pnand %p914_p3, %p908_p0 }
   0xb   :  { %918 = shalt.err (!%p915_p4)
}
   0xc   :  { %s987_s26 = smov 128   ;;  %s988_s27 = smov 8  }
   0xd   :  { %39 = dma.hbm_to_vmem [thread:$0]  %s1191_s2, 256, %s34_s22, [#allocation6], %s987_s26, %s987_s26, %s988_s27  }
   0xe   :  { %s927_s30 = scalar_lea.vmem %s22_s24, 896  ;;  %p932_p6 = scmp.lt.s32.totalorder %s22_s24, %s22_s24 }
   0xf   :  { %p928_p5 = scmp.ne.s32.totalorder %s22_s24, %s927_s30  ;;  %p933_p7 = scmp.lt.s32.totalorder %s927_s30, %s927_s30 }
  0x11   :  { %p934_p8 = por %p933_p7, %p932_p6 }
  0x13   :  { %p935_p9 = pnand %p934_p8, %p928_p5 }
  0x15   :  { %938 = shalt.err (!%p935_p9)
}
  0x16   :  { %27 = dma.hbm_to_vmem [thread:$0]  %s1190_s1, 896, %s22_s24, [#allocation3], %s987_s26, %s987_s26, %s988_s27  }
  0x17   :  { %s989_s9 = smov [#allocation7]  }
  0x18   :  { %s47_s10 = sshll.u32 %s989_s9, 4  ;;  %s48_s10 = int_to_ptr.vmem [resolvable:$true] %s47_s10 }
  0x19   :  { %s947_s11 = scalar_lea.vmem %s48_s10, 1536  ;;  %p952_p11 = scmp.lt.s32.totalorder %s48_s10, %s48_s10 }
  0x1a   :  { %p948_p10 = scmp.ne.s32.totalorder %s48_s10, %s947_s11  ;;  %p953_p12 = scmp.lt.s32.totalorder %s947_s11, %s947_s11 }
  0x1c   :  { %p954_p13 = por %p953_p12, %p952_p11 }
  0x1e   :  { %p955_p0 = pnand %p954_p13, %p948_p10 }
  0x20   :  { %958 = shalt.err (!%p955_p0)
}
  0x21   :  { %s990_s2 = smov 384   ;;  %s991_s12 = smov 24  }
  0x22   :  { %53 = dma.hbm_to_vmem [thread:$0]  %s1193_s4, 1536, %s48_s10, [#allocation6], %s990_s2, %s990_s2, %s991_s12  }
  0x23   :  { %979 = dma.done.wait [#allocation3], 896  }
  0x24   :  { %980 = vsyncadd [#allocation3], 4294966400 }
  0x25   :  { %981 = dma.done.wait [#allocation6], 1792  }
  0x26   :  { %982 = vsyncadd [#allocation6], 4294965504  ;;  %v992_v0 = vmov 0.0   ;;  %vm993_vm0 = vmmov 0   ;;  %v76_v1 = vld [vmem:[#allocation7 + $0x48] sm:$0xff]  ;;  %v75_v2 = vld [vmem:[#allocation7 + $0x30] sm:$0xff]  ;;  %v155_v10 = vlaneseq }
  0x27   :  { %801 = vmatprep.subr.mxu0 %v992_v0  ;;  %809 = vmatprep.mubr.msk.f32.mxu0 %vm993_vm0, %v992_v0  ;;  %v1051_v3 = vld [vmem:[#allocation5] sm:$0xff]  ;;  %v74_v4 = vld [vmem:[#allocation7 + $0x18] sm:$0xff]  ;;  %s994_s1 = smov 96   ;;  %v73_v6 = vld [vmem:[#allocation7] sm:$0xff]  ;;  %vm77_vm1 = vcmask 261120   ;;  %vm220_vm2 = vcmask 1041409  }
  0x28   :  { %812 = vmatprep.subr.mxu1 %v992_v0  ;;  %820 = vmatprep.mubr.msk.f32.mxu1 %vm993_vm0, %v992_v0  ;;  %v1056_v5 = vld [vmem:[#allocation5 + $0x8] sm:$0xff]  ;;  %v995_v8 = vmov 1966171168   ;;  %v1072_v12 = vshrl.u32 %v155_v10, 7  ;;  %v1088_v34 = vand.u32 127, %v155_v10  ;;  %vm223_vm3 = vcmask 58368  }
  0x29   :  { %802 = vmatpush3.msra.mxu0 %v76_v1  ;;  %186 = vrot.lane.b32.xlu0 %v1051_v3, %s994_s1  ;;  %v1062_v7 = vld [vmem:[%s1192_s3] sm:$0x3]  ;;  %v153_v9 = vunpack.c.l.s4 %v995_v8  ;;  %v996_v42 = vmov 0   ;;  %v318_v59 = vld [vmem:[#allocation2 + $0x30] sm:$0x3]  ;;  %vm402_vm4 = vcmask 1041408  }
  0x2a   :  { %803 = vmatprep.subr.mxu0 %v992_v0  ;;  %v1079_v17 = vsub.s32 0, %v1072_v12  ;;  %v762_v27 = vld [vmem:[%s1194_s5] ss:$0 sm:$0xff]  ;;  %v214_v36 = vsub.s32 %v1088_v34, %v1072_v12  ;;  %877 = vset.pattern.permute.xlu1 %v996_v42  ;;  %v234_v43 = vsub.s32 1, %v1072_v12  ;;  %v317_v60 = vld [vmem:[#allocation2 + $0x28] sm:$0xff]  ;;  %v315_v62 = vld [vmem:[#allocation2 + $0x18] sm:$0xff] }
  0x2b   :  { %804 = vmatpush3.msra.mxu0 %v75_v2  ;;  %v154_v11 = vunpack.c.0.s8 %v153_v9  ;;  %878 = vset.pattern.permute.xlu0 %v996_v42  ;;  %v316_v61 = vld [vmem:[#allocation2 + $0x20] sm:$0xff]  ;;  %s997_s19 = smov 32   ;;  %vm398_vm5 = vcmask 408576   ;;  %vm511_vm7 = vcmask 254976   ;;  %vm738_vm8 = vcmask 195584   ;;  %s999_s28 = smov [#allocation8]  }
  0x2c   :  { %805 = vmatprep.subr.mxu0 %v992_v0  ;;  %vm740_vm9 = vcmask 457728   ;;  %s751_s29 = sshll.u32 %s999_s28, 4  ;;  %vm742_vm10 = vcmask 523264   ;;  %s752_s29 = int_to_ptr.vmem [resolvable:$true] %s751_s29 }
  0x2d   :  { %806 = vmatpush3.msra.mxu0 %v74_v4  ;;  %188 = vrot.lane.b32.xlu0 %v1056_v5, %s994_s1  ;;  %v157_v13 = vsub.s32 %v154_v11, %v1072_v12  ;;  %v313_v11 = vld [vmem:[#allocation2 + $0x8] sm:$0xff]  ;;  %s959_s30 = scalar_lea.vmem %s752_s29, 32  ;;  %p964_p2 = scmp.lt.s32.totalorder %s752_s29, %s752_s29 }
  0x2e   :  { %807 = vmatprep.subr.mxu0 %v992_v0  ;;  %p960_p1 = scmp.ne.s32.totalorder %s752_s29, %s959_s30  ;;  %p965_p3 = scmp.lt.s32.totalorder %s959_s30, %s959_s30 }
  0x2f   :  { %808 = vmatpush3.msra.mxu0 %v73_v6  ;;  %v314_v6 = vld [vmem:[#allocation2 + $0x10] sm:$0xff] }
  0x30   :  { %810 = vmatmul.mubr.msk.f32.vlgmr.msra.gmra.mxu0 %vm77_vm1, %v1062_v7  ;;  %823 = vmatprep.subr.mxu0 %v992_v0  ;;  %p966_p4 = por %p965_p3, %p964_p2 }
  0x31   :  { %837 = vmatprep.mubr.msk.f32.mxu0 %vm993_vm0, %v992_v0  ;;  %824 = vmatpush3.msk.msra.mxu0 %vm402_vm4, %v318_v59 }
  0x32   :  { %825 = vmatprep.subr.mxu0 %v992_v0  ;;  %p967_p5 = pnand %p966_p4, %p960_p1 }
  0x33   :  { %826 = vmatpush3.msra.mxu0 %v317_v60 }
  0x34   :  { %827 = vmatprep.subr.mxu0 %v992_v0 }
  0x35   :  { %828 = vmatpush3.msra.mxu0 %v316_v61 }
  0x36   :  { %829 = vmatprep.subr.mxu0 %v992_v0 }
  0x37   :  { %830 = vmatpush3.msra.mxu0 %v315_v62 }
  0x38   :  { %831 = vmatprep.subr.mxu0 %v992_v0 }
  0x39   :  { %832 = vmatpush3.msra.mxu0 %v314_v6 }
  0x3a   :  { %833 = vmatprep.subr.mxu0 %v992_v0 }
  0x3b   :  { %834 = vmatpush3.msra.mxu0 %v313_v11 }
  0x3c   :  { %835 = vmatprep.subr.mxu0 %v992_v0 }
  0x9b   :  { %v187_v15 = vpop.permute.xlu0 %186 }
  0x9f   :  { %v189_v23 = vpop.permute.xlu0 %188 }
  0xf0   :  { %v1075_v14 = vpop.f32.mrf.mxu0 }
  0xf1   :  { %v158_v16 = vrot.slane %v1075_v14, %v157_v13 }
  0xf2   :  { %v811_v18 = vpop.f32.mrf.mxu0 }
  0xf3   :  { %v159_v19 = vcombine.high %v158_v16, %v158_v16  ;;  %v166_v20 = vrot.slane %v158_v16, %v157_v13  ;;  %v1110_v16 = vld [vmem:[#allocation7 + $0x50] sm:$0xff]  ;;  %v1117_v18 = vld [vmem:[#allocation7 + $0x20] sm:$0xff] }
  0xf4   :  { %813 = vmatpush3.msra.mxu1 %v1110_v16 }
  0xf5   :  { %v177_v21 = vrot.slane %v166_v20, %v1079_v17  ;;  %v173_v22 = vrot.slane %v159_v19, %v157_v13  ;;  %v312_v13 = vld [vmem:[#allocation2] sm:$0xff]  ;;  %814 = vmatprep.subr.mxu1 %v992_v0  ;;  %v1122_v19 = vld [vmem:[#allocation7 + $0x8] sm:$0xff]  ;;  %v727_v20 = vadd.s32 4294967240, %v1088_v34 }
  0xf6   :  { %836 = vmatpush3.msra.mxu0 %v312_v13 }
  0xf7   :  { %v192_v24 = vadd.f32 %v187_v15, %v177_v21  ;;  %v181_v25 = vrot.slane %v173_v22, %v1079_v17  ;;  %v306_v15 = vld [vmem:[%s1189_s0] sm:$0x3]  ;;  %v730_v21 = vsub.s32 %v727_v20, %v1072_v12  ;;  %s998_s0 = smov 64  }
  0xf8   :  { %v643_v20 = vld [vmem:[#allocation7 + $0x58] sm:$0xff] }
  0xf9   :  { %879 = vtanh.f32 %v192_v24  ;;  %v193_v26 = vadd.f32 %v189_v23, %v181_v25 }
  0xfb   :  { %881 = vtanh.f32 %v193_v26 }
 0x106   :  { %v880_v28 = vpop.eup %879 }
 0x107   :  { %v200_v29 = vmul.f32 %v880_v28, %v762_v27 }
 0x108   :  { %v882_v30 = vpop.eup %881 }
 0x109   :  { %v202_v31 = vsel %vm77_vm1, %v200_v29, 0.0  ;;  %v201_v32 = vmul.f32 %v882_v30, %v762_v27 }
 0x10a   :  { %203 = vadd.xlane.f32.xlu1 %v202_v31 }
 0x10b   :  { %v205_v33 = vsel %vm77_vm1, %v201_v32, 0.0 }
 0x10e   :  { %206 = vadd.xlane.f32.xlu1 %v205_v33 }
 0x193   :  { %v204_v35 = vpop.xlane.xlu1 %203 }
 0x194   :  { %v215_v38 = vrot.slane %v204_v35, %v214_v36 }
 0x197   :  { %v207_v37 = vpop.xlane.xlu1 %206 }
 0x198   :  { %v219_v39 = vrot.slane %v207_v37, %v214_v36 }
 0x19a   :  { %v221_v40 = vsel %vm220_vm2, %v219_v39, %v215_v38 }
 0x19b   :  { %v224_v41 = vsel %vm223_vm3, %v221_v40, -inf }
 0x19c   :  { %225 = vmax.xlane.f32.xlu0 %v224_v41 }
 0x225   :  { %v226_v44 = vpop.xlane.xlu0 %225 }
 0x226   :  { %v231_v45 = vrot.slane %v226_v44, %v1079_v17  ;;  %v235_v46 = vrot.slane %v226_v44, %v234_v43 }
 0x228   :  { %v238_v47 = vsub.f32 %v204_v35, %v231_v45  ;;  %v239_v48 = vsub.f32 %v207_v37, %v235_v46 }
 0x22a   :  { %v240_v49 = vmul.f32 1.442695, %v238_v47  ;;  %v242_v50 = vmul.f32 1.442695, %v239_v48 }
 0x22c   :  { %883 = vpow2.f32 %v240_v49 }
 0x22d   :  { %885 = vpow2.f32 %v242_v50 }
 0x239   :  { %v884_v51 = vpop.eup %883 }
 0x23a   :  { %247 = vperm.xlu1 %877, %v884_v51   ;;  %v886_v52 = vpop.eup %885 }
 0x23e   :  { %250 = vperm.xlu1 %877, %v886_v52  }
 0x2b5   :  { %v248_v53 = vpop.permute.xlu1 %247 }
 0x2b6   :  { %v255_v55 = vrot.slane %v248_v53, %v214_v36 }
 0x2b9   :  { %v251_v54 = vpop.permute.xlu1 %250 }
 0x2ba   :  { %v259_v56 = vrot.slane %v251_v54, %v214_v36 }
 0x2bc   :  { %v260_v57 = vsel %vm220_vm2, %v259_v56, %v255_v55 }
 0x2bd   :  { %v262_v58 = vsel %vm223_vm3, %v260_v57, 0.0 }
 0x2be   :  { %263 = vadd.xlane.f32.xlu1 %v262_v58 }
 0x347   :  { %v264_v63 = vpop.xlane.xlu1 %263 }
 0x348   :  { %v269_v1 = vrot.slane %v264_v63, %v1079_v17  ;;  %v273_v2 = vrot.slane %v264_v63, %v234_v43  ;;  %v1114_v17 = vld [vmem:[#allocation7 + $0x38] sm:$0xff] }
 0x349   :  { %815 = vmatpush3.msra.mxu1 %v1114_v17 }
 0x34a   :  { %887 = vrcp.f32 %v269_v1  ;;  %816 = vmatprep.subr.mxu1 %v992_v0 }
 0x34b   :  { %889 = vrcp.f32 %v273_v2  ;;  %817 = vmatpush3.msra.mxu1 %v1117_v18 }
 0x34c   :  { %818 = vmatprep.subr.mxu1 %v992_v0 }
 0x34d   :  { %819 = vmatpush3.msra.mxu1 %v1122_v19 }
 0x34e   :  { %840 = vmatprep.subr.mxu1 %v992_v0 }
 0x357   :  { %v888_v4 = vpop.eup %887 }
 0x358   :  { %v890_v8 = vpop.eup %889  ;;  %v277_v9 = vmul.f32 %v888_v4, %v884_v51 }
 0x359   :  { %v279_v10 = vmul.f32 %v890_v8, %v886_v52 }
 0x35a   :  { %282 = vperm.xlu0 %878, %v277_v9  }
 0x35b   :  { %287 = vperm.xlu1 %877, %v279_v10  }
 0x35e   :  { %476 = vrot.lane.b32.xlu0 %v1075_v14, %s994_s1 }
 0x35f   :  { %308 = vperm.xlu1 %877, %v306_v15  }
 0x363   :  { %486 = vrot.lane.b32.xlu1 %v1075_v14, %s997_s19 }
 0x3d5   :  { %v283_v22 = vpop.permute.xlu0 %282 }
 0x3d6   :  { %v288_v23 = vpop.permute.xlu1 %287  ;;  %v290_v14 = vmul.f32 %v283_v22, %v1051_v3  ;;  %v731_v24 = vrot.slane %v283_v22, %v730_v21  ;;  %v641_v22 = vld [vmem:[#allocation7 + $0x28] sm:$0xff] }
 0x3d7   :  { %v291_v25 = vmul.f32 %v288_v23, %v1056_v5  ;;  %v735_v26 = vrot.slane %v288_v23, %v730_v21  ;;  %v642_v21 = vld [vmem:[#allocation7 + $0x40] sm:$0xff] }
 0x3d8   :  { %v292_v27 = vsel %vm77_vm1, %v290_v14, 0.0 }
 0x3d9   :  { %v299_v28 = vsel %vm77_vm1, %v291_v25, 0.0  ;;  %v293_v29 = vrot.slane %v292_v27, 4  ;;  %v1135_v30 = vsel %vm220_vm2, %v735_v26, %v731_v24  ;;  %v477_v46 = vpop.permute.xlu0 %476  ;;  %v640_v25 = vld [vmem:[#allocation7 + $0x10] sm:$0xff] }
 0x3da   :  { %v300_v31 = vrot.slane %v299_v28, 4  ;;  %v309_v32 = vpop.permute.xlu1 %308 }
 0x3db   :  { %v294_v12 = vadd.f32 %v293_v29, %v292_v27  ;;  %vm310_vm6 = vcmp.eq.s32.totalorder %v1088_v34, %v309_v32  ;;  %v769_v32 = vld [vmem:[%s1194_s5 + $0x3] ss:$0 sm:$0xff] }
 0x3dc   :  { %v301_v33 = vadd.f32 %v300_v31, %v299_v28  ;;  %v311_v3 = vsel %vm310_vm6, 1.0, %v992_v0 }
 0x3dd   :  { %v295_v35 = vrot.slane %v294_v12, 2  ;;  %838 = vmatmul.mubr.msk.f32.vlgmr.msra.gmra.mxu0 %vm398_vm5, %v311_v3 }
 0x3de   :  { %v302_v5 = vrot.slane %v301_v33, 2  ;;  %v487_v53 = vpop.permute.xlu1 %486 }
 0x3df   :  { %v296_v36 = vadd.f32 %v295_v35, %v294_v12  ;;  %v771_v35 = vld [vmem:[%s1194_s5 + $0x4] ss:$0 sm:$0xff] }
 0x3e0   :  { %v303_v37 = vadd.f32 %v302_v5, %v301_v33 }
 0x3e1   :  { %v297_v38 = vrot.slane %v296_v36, 1 }
 0x3e2   :  { %v304_v39 = vrot.slane %v303_v37, 1 }
 0x3e3   :  { %v298_v40 = vadd.f32 %v297_v38, %v296_v36 }
 0x3e4   :  { %v305_v41 = vadd.f32 %v304_v39, %v303_v37 }
 0x3e6   :  { %v325_v42 = vsel %vm220_vm2, %v305_v41, %v298_v40 }
 0x3e7   :  { %821 = vmatmul.mubr.msk.f32.vlgmr.msra.gmra.mxu1 %vm77_vm1, %v325_v42 }
 0x3e8   :  { %848 = vmatprep.mubr.msk.f32.mxu1 %vm993_vm0, %v992_v0 }
 0x49d   :  { %v472_v34 = vpop.f32.mrf.mxu0 }
 0x49f   :  { %v839_v43 = vpop.f32.mrf.mxu0 }
 0x4a7   :  { %v394_v44 = vpop.f32.mrf.mxu1 }
 0x4a8   :  { %v473_v45 = vadd.f32 %v472_v34, %v394_v44 }
 0x4a9   :  { %v822_v47 = vpop.f32.mrf.mxu1 }
 0x4aa   :  { %v479_v48 = vadd.f32 %v477_v46, %v473_v45 }
 0x4ac   :  { %v766_v49 = vmul.f32 -1.442695, %v479_v48 }
 0x4ae   :  { %891 = vpow2.f32 %v766_v49 }
 0x4bb   :  { %v892_v50 = vpop.eup %891 }
 0x4bc   :  { %v483_v51 = vadd.f32 1.0, %v892_v50 }
 0x4be   :  { %893 = vrcp.f32 %v483_v51 }
 0x4cb   :  { %v894_v52 = vpop.eup %893 }
 0x4cc   :  { %v489_v54 = vmul.f32 %v894_v52, %v487_v53  ;;  %v496_v59 = vsub.f32 1.0, %v894_v52 }
 0x4ce   :  { %491 = vrot.lane.b32.xlu0 %v489_v54, %s998_s0 }
 0x4d2   :  { %502 = vrot.lane.b32.xlu0 %v1062_v7, %s997_s19  ;;  %v767_v7 = vld [vmem:[%s1194_s5 + $0x1] ss:$0 sm:$0xff] }
 0x540   :  { %v492_v55 = vpop.permute.xlu0 %491 }
 0x541   :  { %v494_v56 = vadd.f32 %v492_v55, %v473_v45 }
 0x543   :  { %895 = vtanh.f32 %v494_v56 }
 0x544   :  { %v503_v58 = vpop.permute.xlu0 %502 }
 0x545   :  { %v505_v61 = vmul.f32 %v894_v52, %v503_v58 }
 0x550   :  { %v896_v57 = vpop.eup %895 }
 0x551   :  { %498 = vrot.lane.b32.xlu1 %v896_v57, %s994_s1 }
 0x5c3   :  { %v499_v60 = vpop.permute.xlu1 %498 }
 0x5c4   :  { %v501_v62 = vmul.f32 %v499_v60, %v496_v59 }
 0x5c6   :  { %v506_v63 = vadd.f32 %v505_v61, %v501_v62 }
 0x5c8   :  { %508 = vrot.lane.b32.xlu1 %v506_v63, %s994_s1 }
 0x63a   :  { %v509_v1 = vpop.permute.xlu1 %508 }
 0x63b   :  { %v512_v2 = vsel %vm511_vm7, %v509_v1, 0.0 }
 0x63c   :  { %513 = vadd.xlane.f32.xlu0 %v512_v2 }
 0x652   :  { %562 = vrot.lane.b32.xlu0 %v1110_v16, %s997_s19 }
 0x656   :  { %535 = vrot.lane.b32.xlu0 %v767_v7, %s997_s19 }
 0x65a   :  { %558 = vrot.lane.b32.xlu0 %v1117_v18, %s997_s19 }
 0x65e   :  { %556 = vrot.lane.b32.xlu0 %v1122_v19, %s997_s19 }
 0x6c5   :  { %v514_v4 = vpop.xlane.xlu0 %513 }
 0x6c6   :  { %v516_v6 = vmul.f32 0.03125, %v514_v4 }
 0x6c8   :  { %v517_v8 = vsub.f32 %v506_v63, %v516_v6 }
 0x6c9   :  { %v563_v9 = vpop.permute.xlu0 %562 }
 0x6ca   :  { %v518_v10 = vmul.f32 %v517_v8, %v517_v8  ;;  %841 = vmatpush3.msra.mxu1 %v563_v9 }
 0x6cb   :  { %842 = vmatprep.subr.mxu1 %v992_v0 }
 0x6cc   :  { %520 = vrot.lane.b32.xlu1 %v518_v10, %s994_s1 }
 0x6cd   :  { %v536_v11 = vpop.permute.xlu0 %535 }
 0x6d0   :  { %560 = vrot.lane.b32.xlu1 %v1114_v17, %s997_s19  ;;  %v768_v17 = vld [vmem:[%s1194_s5 + $0x2] ss:$0 sm:$0xff] }
 0x6d1   :  { %v559_v15 = vpop.permute.xlu0 %558 }
 0x6d5   :  { %v557_v19 = vpop.permute.xlu0 %556 }
 0x73e   :  { %v521_v13 = vpop.permute.xlu1 %520 }
 0x73f   :  { %v523_v16 = vsel %vm511_vm7, %v521_v13, 0.0 }
 0x740   :  { %524 = vadd.xlane.f32.xlu1 %v523_v16 }
 0x742   :  { %v561_v18 = vpop.permute.xlu1 %560 }
 0x743   :  { %843 = vmatpush3.msra.mxu1 %v561_v18 }
 0x744   :  { %844 = vmatprep.subr.mxu1 %v992_v0 }
 0x745   :  { %845 = vmatpush3.msra.mxu1 %v559_v15 }
 0x746   :  { %846 = vmatprep.subr.mxu1 %v992_v0 }
 0x747   :  { %847 = vmatpush3.msra.mxu1 %v557_v19 }
 0x748   :  { %849 = vmatmul.mubr.msk.f32.vlgmr.msra.gmra.mxu1 %vm77_vm1, %v509_v1  ;;  %851 = vmatprep.subr.mxu1 %v992_v0 }
 0x749   :  { %859 = vmatprep.mubr.msk.f32.mxu1 %vm993_vm0, %v992_v0  ;;  %852 = vmatpush3.msra.mxu1 %v643_v20 }
 0x74a   :  { %853 = vmatprep.subr.mxu1 %v992_v0 }
 0x74b   :  { %854 = vmatpush3.msra.mxu1 %v642_v21 }
 0x74c   :  { %855 = vmatprep.subr.mxu1 %v992_v0 }
 0x74d   :  { %856 = vmatpush3.msra.mxu1 %v641_v22 }
 0x74e   :  { %857 = vmatprep.subr.mxu1 %v992_v0 }
 0x74f   :  { %858 = vmatpush3.msra.mxu1 %v640_v25 }
 0x751   :  { %544 = vrot.lane.b32.xlu1 %v768_v17, %s997_s19 }
 0x7c9   :  { %v525_v23 = vpop.xlane.xlu1 %524 }
 0x7ca   :  { %v526_v14 = vmul.f32 0.03125, %v525_v23 }
 0x7cc   :  { %v527_v24 = vadd.f32 1e-05, %v526_v14 }
 0x7cd   :  { %v545_v28 = vpop.permute.xlu1 %544 }
 0x7ce   :  { %897 = vrsqrt.f32 %v527_v24 }
 0x7db   :  { %v898_v26 = vpop.eup %897 }
 0x7dc   :  { %v529_v27 = vmul.f32 %v898_v26, %v517_v8 }
 0x7de   :  { %v538_v29 = vmul.f32 %v536_v11, %v529_v27 }
 0x7e0   :  { %v547_v31 = vadd.f32 %v545_v28, %v538_v29 }
 0x7e2   :  { %649 = vrot.lane.b32.xlu1 %v547_v31, %s994_s1 }
 0x808   :  { %v636_v12 = vpop.f32.mrf.mxu1 }
 0x809   :  { %v637_v33 = vadd.f32 %v769_v32, %v636_v12 }
 0x80a   :  { %v850_v0 = vpop.f32.mrf.mxu1 }
 0x80b   :  { %724 = vrot.lane.b32.xlu0 %v637_v33, %s991_s12 }
 0x854   :  { %v650_v3 = vpop.permute.xlu1 %649 }
 0x855   :  { %860 = vmatmul.mubr.msk.f32.vlgmr.msra.gmra.mxu1 %vm77_vm1, %v650_v3 }
 0x87d   :  { %v725_v37 = vpop.permute.xlu0 %724 }
 0x915   :  { %v719_v5 = vpop.f32.mrf.mxu1 }
 0x916   :  { %v720_v36 = vadd.f32 %v771_v35, %v719_v5 }
 0x917   :  { %v861_v38 = vpop.f32.mrf.mxu1 }
 0x918   :  { %v739_v39 = vsel %vm738_vm8, %v720_v36, %v725_v37 }
 0x919   :  { %v741_v40 = vsel %vm740_vm9, %v739_v39, %v1135_v30 }
 0x91a   :  { %v743_v41 = vsel %vm742_vm10, %v741_v40, 0.0 }
 0x91b   :  { %744 = vst [vmem:[#allocation8] sm:$0x3] %v743_v41 }
 0x91c   :  { %970 = shalt.err (!%p967_p5)
}
 0x91d   :  { %754 = dma.vmem_to_hbm [thread:$0]  %s752_s29, 32, %s1195_s6, [#allocation4]  }
 0x91e   :  { %983 = dma.done.wait [#allocation4], 32  }
 0x91f   :  { %984 = vsyncadd [#allocation4], 4294967264 }
 0x920   :  { %758 = vsyncpa [#allocation3], 1 }
 0x921   :  { %759 = vsyncpa [#allocation6], 1 }
 0x922   :  { %760 = vsyncpa [#allocation4], 1 }

</bundles_post_ra>
